<compile_context>
chip_gen: v7x
topology: tpu7x:2x2x1
jax: 0.10.0
libtpu: 0.0.40
codegen_flags: <defaults>
</compile_context>

<pallas_src>
import jax
import jax.numpy as jnp
import numpy as np
from jax.experimental import pallas as pl
from jax.experimental.pallas import tpu as pltpu

N, C_IN, C_OUT, H, W = 2, 8, 8, 16, 16
SUPER_K = 5            # super-kernel size of the entangled SepConv weights
SUB_K = 3              # sub-sampled kernel size
SUPER_PAD = 2          # padding of the super op -> sub-conv padding = SUPER_PAD - 1 = 1
SUB_PAD = SUPER_PAD - 1
BN_EPS = 1e-5

WC_IN = W * C_IN       # 128 -> lane-dense last dim
WC_OUT = W * C_OUT     # 128 -> lane-dense last dim


def _fused_sepconv_kernel(x_ref, m1_ref, s1_ref, m2_ref, s2_ref, out_ref, buf_ref):
    """Both SepConv stages fused, intermediate kept in VMEM.

    x_ref   : (N, H, W*C_in)          NHWC activations flattened to a lane-dense last dim
    m1_ref  : (3*W*C_in, W*C_in)      stage-1 folded (depthwise x pointwise x BN scale)
    s1_ref  : (1, W*C_in)             stage-1 folded BN shift (tiled over W)
    m2_ref  : (3*W*C_in, W*C_out)     stage-2 folded matrix
    s2_ref  : (1, W*C_out)            stage-2 folded BN shift
    out_ref : (N, H, W*C_out)
    buf_ref : (N, H+2, W*C_in)        VMEM scratch: H-zero-padded working buffer
    """
    n, h, wc_in = x_ref.shape
    wc_out = out_ref.shape[-1]

    # Zero only the two H-halo rows; interior rows are always overwritten below.
    zero_row = jnp.zeros((n, 1, wc_in), jnp.float32)
    buf_ref[:, 0:1, :] = zero_row
    buf_ref[:, h + 1:h + 2, :] = zero_row

    # Stage-1 input: ReLU(x), zero-padded in H (identical to the conv's own zero padding).
    buf_ref[:, 1:h + 1, :] = jnp.maximum(x_ref[...], 0.0)

    def stage(m_ref, s_ref):
        # depthwise 3x3 + pointwise 1x1 + BN scale == ONE block-structured MXU matmul:
        # gather the 3 H-shifted row windows along lanes -> (N*H, 3*W*C_in), contract.
        xs = jnp.concatenate(
            [buf_ref[:, kh:kh + h, :] for kh in range(SUB_K)], axis=-1
        ).reshape(n * h, SUB_K * wc_in)
        acc = jnp.dot(xs, m_ref[...], preferred_element_type=jnp.float32)
        return acc + s_ref[...]                      # folded BN shift

    # Stage 1: ReLU -> dw1 -> pw1 -> BN1 -> ReLU ; result stays in VMEM.
    y1 = jnp.maximum(stage(m1_ref, s1_ref), 0.0)
    buf_ref[:, 1:h + 1, :] = y1.reshape(n, h, wc_in)   # re-pad in place (halo rows still 0)

    # Stage 2: dw2 -> pw2 -> BN2.
    out_ref[...] = stage(m2_ref, s2_ref).reshape(n, h, wc_out)


def _fold_stage(dw_super, pw, gamma, beta, mean, var):
    """Fold (5x5->3x3 sub-sampled depthwise, 1x1 pointwise, eval-mode BN scale) of one stage
    into a single (3*W*C_in, W*C_out) block-structured matrix (kh-major rows, block-
    tridiagonal in W) plus a W-tiled shift vector, laid out for the (N, H, W*C) lane-dense
    kernel layout."""
    c_in = dw_super.shape[0]
    c_out = pw.shape[0]

    taps = dw_super[:, 0, 1:1 + SUB_K, 1:1 + SUB_K]          # (C_in, 3, 3)  [ci, kh, kw]
    scale = gamma / jnp.sqrt(var + BN_EPS)                   # (C_out,)
    shift = beta - mean * scale                              # (C_out,)
    pw_scaled = pw[:, :, 0, 0] * scale[:, None]              # (C_out, C_in), BN scale folded

    win = jnp.arange(W)[:, None]                             # input width position
    wout = jnp.arange(W)[None, :]                            # output width position
    kw = win - wout + 1                                      # depthwise kw tap index
    valid = (kw >= 0) & (kw <= SUB_K - 1)                    # 3-tap band (also handles W edges)
    kw_c = jnp.clip(kw, 0, SUB_K - 1)

    # tap_sel[ci, kh, win, wout] = taps[ci, kh, win - wout + 1], 0 outside the band.
    tap_sel = jnp.where(valid[None, None], taps[:, :, kw_c], 0.0)      # (C_in, 3, W, W)
    tap_sel = jnp.transpose(tap_sel, (1, 2, 3, 0))                     # (3, W_in, W_out, C_in)

    # mats[kh, win*C_in + ci, wout*C_out + co] = tap_sel[kh,win,wout,ci] * pw_scaled[co,ci]
    mats = jnp.einsum('kabi,oi->kaibo', tap_sel, pw_scaled)            # (3, W, C_in, W, C_out)
    mats = mats.reshape(SUB_K * W * c_in, W * c_out)                   # kh-major stacked rows
    shift_tiled = jnp.tile(shift, (W,)).reshape(1, W * c_out)
    return mats, shift_tiled


@jax.jit
def sepconv_subsample(x_nchw, params):
    """Forward of SepConvSubSample. Input/output are NCHW float32."""
    (dw1_super, pw1, g1, b1, m1, v1,
     dw2_super, pw2, g2, b2, m2, v2) = params

    # One-time weight folding (tiny; hoist out of the hot path when weights are static).
    mats1, shift1 = _fold_stage(dw1_super, pw1, g1, b1, m1, v1)   # (384,128), (1,128)
    mats2, shift2 = _fold_stage(dw2_super, pw2, g2, b2, m2, v2)   # (384,128), (1,128)

    # NCHW -> lane-dense (N, H, W*C). In-kernel H padding replaces any jnp.pad calls.
    x = jnp.transpose(x_nchw, (0, 2, 3, 1)).astype(jnp.float32).reshape(N, H, WC_IN)

    vmem = pl.BlockSpec(memory_space=pltpu.MemorySpace.VMEM)
    out = pl.pallas_call(
        _fused_sepconv_kernel,
        out_shape=jax.ShapeDtypeStruct((N, H, WC_OUT), jnp.float32),
        in_specs=[vmem] * 5,
        out_specs=vmem,
        scratch_shapes=[pltpu.VMEM((N, H + 2 * SUB_PAD, WC_IN), jnp.float32)],
    )(x, mats1, shift1, mats2, shift2)

    return jnp.transpose(out.reshape(N, H, W, C_OUT), (0, 3, 1, 2))    # back to NCHW


# ---------------- pure-JAX reference (NCHW, mirrors the PyTorch forward) -------------
def _reference(x, params):
    (dw1_super, pw1, g1, b1, m1, v1,
     dw2_super, pw2, g2, b2, m2, v2) = params

    def dwconv(x, super_w):
        w = super_w[:, :, 1:1 + SUB_K, 1:1 + SUB_K]
        return jax.lax.conv_general_dilated(
            x, w, (1, 1), [(SUB_PAD, SUB_PAD)] * 2,
            dimension_numbers=("NCHW", "OIHW", "NCHW"),
            feature_group_count=x.shape[1])

    def pwconv(x, w):
        return jax.lax.conv_general_dilated(
            x, w, (1, 1), [(0, 0), (0, 0)],
            dimension_numbers=("NCHW", "OIHW", "NCHW"))

    def bn(x, g, b, m, v):
        inv = g / jnp.sqrt(v + BN_EPS)
        return x * inv[None, :, None, None] + (b - m * inv)[None, :, None, None]

    y = jnp.maximum(x, 0.0)
    y = dwconv(y, dw1_super)
    y = pwconv(y, pw1)
    y = bn(y, g1, b1, m1, v1)
    y = jnp.maximum(y, 0.0)
    y = dwconv(y, dw2_super)
    y = pwconv(y, pw2)
    y = bn(y, g2, b2, m2, v2)
    return y


def _make_params(key):
    ks = jax.random.split(key, 12)
    dw1_super = jax.random.normal(ks[0], (C_IN, 1, SUPER_K, SUPER_K), jnp.float32) * 0.2
    pw1 = jax.random.normal(ks[1], (C_IN, C_IN, 1, 1), jnp.float32) * 0.2
    g1 = jax.random.uniform(ks[2], (C_IN,), jnp.float32, 0.5, 1.5)
    b1 = jax.random.normal(ks[3], (C_IN,), jnp.float32) * 0.1
    m1 = jax.random.normal(ks[4], (C_IN,), jnp.float32) * 0.1
    v1 = jax.random.uniform(ks[5], (C_IN,), jnp.float32, 0.5, 1.5)
    dw2_super = jax.random.normal(ks[6], (C_IN, 1, SUPER_K, SUPER_K), jnp.float32) * 0.2
    pw2 = jax.random.normal(ks[7], (C_OUT, C_IN, 1, 1), jnp.float32) * 0.2
    g2 = jax.random.uniform(ks[8], (C_OUT,), jnp.float32, 0.5, 1.5)
    b2 = jax.random.normal(ks[9], (C_OUT,), jnp.float32) * 0.1
    m2 = jax.random.normal(ks[10], (C_OUT,), jnp.float32) * 0.1
    v2 = jax.random.uniform(ks[11], (C_OUT,), jnp.float32, 0.5, 1.5)
    return (dw1_super, pw1, g1, b1, m1, v1, dw2_super, pw2, g2, b2, m2, v2)


if __name__ == "__main__":
    key = jax.random.PRNGKey(0)
    kx, kp = jax.random.split(key)
    x = jax.random.normal(kx, (N, C_IN, H, W), jnp.float32)
    params = _make_params(kp)

    out = jax.block_until_ready(sepconv_subsample(x, params))
    ref = jax.block_until_ready(_reference(x, params))

    np.testing.assert_allclose(np.asarray(out), np.asarray(ref), rtol=1e-3, atol=1e-3)
    assert out.shape == (N, C_OUT, H, W)
    print("KERNEL_OK")
</pallas_src>

<mosaic_0001>
module attributes {stable_mosaic.version = 11 : i64} {
  func.func @_fused_sepconv_kernel(%arg0: memref<2x16x128xf32, #tpu.memory_space<vmem>>, %arg1: memref<384x128xf32, #tpu.memory_space<vmem>>, %arg2: memref<1x128xf32, #tpu.memory_space<vmem>>, %arg3: memref<384x128xf32, #tpu.memory_space<vmem>>, %arg4: memref<1x128xf32, #tpu.memory_space<vmem>>, %arg5: memref<2x16x128xf32, #tpu.memory_space<vmem>>, %arg6: memref<2x18x128xf32, #tpu.memory_space<vmem>>) attributes {dimension_semantics = [], scalar_prefetch = 0 : i64, scratch_operands = 1 : i64, tpu.core_type = #tpu.core_type<tc>} {
    %cst = arith.constant 0.000000e+00 : f32
    %0 = vector.broadcast %cst : f32 to vector<2x1x128xf32>
    %c0 = arith.constant 0 : index
    %c0_0 = arith.constant 0 : index
    %c0_1 = arith.constant 0 : index
    %1 = vector.load %arg6[%c0, %c0_0, %c0_1] : memref<2x18x128xf32, #tpu.memory_space<vmem>>, vector<2x1x128xf32>
    tpu.vector_store %arg6[%c0, %c0_0, %c0_1], %0 {strides = array<i32>} : memref<2x18x128xf32, #tpu.memory_space<vmem>>, vector<2x1x128xf32>,
    %c0_2 = arith.constant 0 : index
    %c17 = arith.constant 17 : index
    %c0_3 = arith.constant 0 : index
    %2 = vector.load %arg6[%c0_2, %c17, %c0_3] : memref<2x18x128xf32, #tpu.memory_space<vmem>>, vector<2x1x128xf32>
    tpu.vector_store %arg6[%c0_2, %c17, %c0_3], %0 {strides = array<i32>} : memref<2x18x128xf32, #tpu.memory_space<vmem>>, vector<2x1x128xf32>,
    %c0_4 = arith.constant 0 : index
    %c0_5 = arith.constant 0 : index
    %c0_6 = arith.constant 0 : index
    %3 = vector.load %arg0[%c0_4, %c0_5, %c0_6] : memref<2x16x128xf32, #tpu.memory_space<vmem>>, vector<2x16x128xf32>
    %cst_7 = arith.constant 0.000000e+00 : f32
    %4 = vector.broadcast %cst_7 : f32 to vector<2x16x128xf32>
    %5 = arith.maximumf %3, %4 : vector<2x16x128xf32>
    %c0_8 = arith.constant 0 : index
    %c1 = arith.constant 1 : index
    %c0_9 = arith.constant 0 : index
    %6 = vector.load %arg6[%c0_8, %c1, %c0_9] : memref<2x18x128xf32, #tpu.memory_space<vmem>>, vector<2x16x128xf32>
    tpu.vector_store %arg6[%c0_8, %c1, %c0_9], %5 {strides = array<i32>} : memref<2x18x128xf32, #tpu.memory_space<vmem>>, vector<2x16x128xf32>,
    %c0_10 = arith.constant 0 : index
    %c0_11 = arith.constant 0 : index
    %c0_12 = arith.constant 0 : index
    %7 = vector.load %arg6[%c0_10, %c0_11, %c0_12] : memref<2x18x128xf32, #tpu.memory_space<vmem>>, vector<2x16x128xf32>
    %c0_13 = arith.constant 0 : index
    %c1_14 = arith.constant 1 : index
    %c0_15 = arith.constant 0 : index
    %8 = vector.load %arg6[%c0_13, %c1_14, %c0_15] : memref<2x18x128xf32, #tpu.memory_space<vmem>>, vector<2x16x128xf32>
    %c0_16 = arith.constant 0 : index
    %c2 = arith.constant 2 : index
    %c0_17 = arith.constant 0 : index
    %9 = vector.load %arg6[%c0_16, %c2, %c0_17] : memref<2x18x128xf32, #tpu.memory_space<vmem>>, vector<2x16x128xf32>
    %10 = tpu.concatenate %7, %8, %9 in 2 : vector<2x16x128xf32>, vector<2x16x128xf32>, vector<2x16x128xf32> -> vector<2x16x384xf32>
    %11 = vector.shape_cast %10 : vector<2x16x384xf32> to vector<32x384xf32>
    %c0_18 = arith.constant 0 : index
    %c0_19 = arith.constant 0 : index
    %12 = vector.load %arg1[%c0_18, %c0_19] : memref<384x128xf32, #tpu.memory_space<vmem>>, vector<384x128xf32>
    %cst_20 = arith.constant dense<0.000000e+00> : vector<32x128xf32>
    %13 = tpu.matmul %11, %12, %cst_20 {dimension_numbers = #tpu.dot_dimension_numbers<[1], [0], [0], [1], [0, 0, 1, 1], [], []>} : vector<32x384xf32>, vector<384x128xf32>, vector<32x128xf32> -> vector<32x128xf32>
    %c0_21 = arith.constant 0 : index
    %c0_22 = arith.constant 0 : index
    %14 = vector.load %arg2[%c0_21, %c0_22] : memref<1x128xf32, #tpu.memory_space<vmem>>, vector<1x128xf32>
    %15 = vector.broadcast %14 : vector<1x128xf32> to vector<32x128xf32>
    %16 = arith.addf %13, %15 : vector<32x128xf32>
    %cst_23 = arith.constant 0.000000e+00 : f32
    %17 = vector.broadcast %cst_23 : f32 to vector<32x128xf32>
    %18 = arith.maximumf %16, %17 : vector<32x128xf32>
    %19 = vector.shape_cast %18 : vector<32x128xf32> to vector<2x16x128xf32>
    %c0_24 = arith.constant 0 : index
    %c1_25 = arith.constant 1 : index
    %c0_26 = arith.constant 0 : index
    %20 = vector.load %arg6[%c0_24, %c1_25, %c0_26] : memref<2x18x128xf32, #tpu.memory_space<vmem>>, vector<2x16x128xf32>
    tpu.vector_store %arg6[%c0_24, %c1_25, %c0_26], %19 {strides = array<i32>} : memref<2x18x128xf32, #tpu.memory_space<vmem>>, vector<2x16x128xf32>,
    %c0_27 = arith.constant 0 : index
    %c0_28 = arith.constant 0 : index
    %c0_29 = arith.constant 0 : index
    %21 = vector.load %arg6[%c0_27, %c0_28, %c0_29] : memref<2x18x128xf32, #tpu.memory_space<vmem>>, vector<2x16x128xf32>
    %c0_30 = arith.constant 0 : index
    %c1_31 = arith.constant 1 : index
    %c0_32 = arith.constant 0 : index
    %22 = vector.load %arg6[%c0_30, %c1_31, %c0_32] : memref<2x18x128xf32, #tpu.memory_space<vmem>>, vector<2x16x128xf32>
    %c0_33 = arith.constant 0 : index
    %c2_34 = arith.constant 2 : index
    %c0_35 = arith.constant 0 : index
    %23 = vector.load %arg6[%c0_33, %c2_34, %c0_35] : memref<2x18x128xf32, #tpu.memory_space<vmem>>, vector<2x16x128xf32>
    %24 = tpu.concatenate %21, %22, %23 in 2 : vector<2x16x128xf32>, vector<2x16x128xf32>, vector<2x16x128xf32> -> vector<2x16x384xf32>
    %25 = vector.shape_cast %24 : vector<2x16x384xf32> to vector<32x384xf32>
    %c0_36 = arith.constant 0 : index
    %c0_37 = arith.constant 0 : index
    %26 = vector.load %arg3[%c0_36, %c0_37] : memref<384x128xf32, #tpu.memory_space<vmem>>, vector<384x128xf32>
    %cst_38 = arith.constant dense<0.000000e+00> : vector<32x128xf32>
    %27 = tpu.matmul %25, %26, %cst_38 {dimension_numbers = #tpu.dot_dimension_numbers<[1], [0], [0], [1], [0, 0, 1, 1], [], []>} : vector<32x384xf32>, vector<384x128xf32>, vector<32x128xf32> -> vector<32x128xf32>
    %c0_39 = arith.constant 0 : index
    %c0_40 = arith.constant 0 : index
    %28 = vector.load %arg4[%c0_39, %c0_40] : memref<1x128xf32, #tpu.memory_space<vmem>>, vector<1x128xf32>
    %29 = vector.broadcast %28 : vector<1x128xf32> to vector<32x128xf32>
    %30 = arith.addf %27, %29 : vector<32x128xf32>
    %31 = vector.shape_cast %30 : vector<32x128xf32> to vector<2x16x128xf32>
    %c0_41 = arith.constant 0 : index
    %c0_42 = arith.constant 0 : index
    %c0_43 = arith.constant 0 : index
    %32 = vector.load %arg5[%c0_41, %c0_42, %c0_43] : memref<2x16x128xf32, #tpu.memory_space<vmem>>, vector<2x16x128xf32>
    tpu.vector_store %arg5[%c0_41, %c0_42, %c0_43], %31 {strides = array<i32>} : memref<2x16x128xf32, #tpu.memory_space<vmem>>, vector<2x16x128xf32>,
    return
  }
}

</mosaic_0001>

<bundles_post_ra>
// kernel: tile.18
= control target key start
LH: loop header
LB: loop body
LE: loop exit
PB: predicated region body
PF: predicated region fallthrough
CT: control target
= control target key end

     0   :  { %s28_s0 = inlined_call_operand.vmem [shape: f32[8], index: 0, kind: input, shape index: {}]   ;;  %s29_s1 = inlined_call_operand.vmem [shape: f32[16,8], index: 1, kind: output, shape index: {}]  }
   0x1   :  { %v4_v0 = vld [vmem:[%s28_s0] ss:$0 sm:$0xff] }
   0x2   :  { %5 = vst [vmem:[%s29_s1] sm:$0xff] %v4_v0  ;;  %8 = vst [vmem:[%s29_s1 + $0x8] sm:$0xff] %v4_v0 }

// kernel: tile.19
= control target key start
LH: loop header
LB: loop body
LE: loop exit
PB: predicated region body
PF: predicated region fallthrough
CT: control target
= control target key end

     0   :  { %s131_s10 = smov 120   ;;  %s132_s11 = smov 104   ;;  %vm3_vm0 = vcmask 64512   ;;  %vm9_vm1 = vcmask 1048512   ;;  %vm15_vm2 = vcmask 982912   ;;  %vm21_vm3 = vcmask 917312   ;;  %s207_s0 = inlined_call_operand.vmem [shape: f32[16,8], index: 0, kind: input, shape index: {}]   ;;  %s208_s1 = inlined_call_operand.vmem [shape: f32[1,128], index: 1, kind: output, shape index: {}]  }
   0x1   :  { %v101_v0 = vld [vmem:[%s207_s0 + $0xf] sm:$0x1]   ;;  %v103_v1 = vld [vmem:[%s207_s0 + $0xd] sm:$0x1]   ;;  %v102_v2 = vld [vmem:[%s207_s0 + $0xe] sm:$0x1]  }
   0x2   :  { %7 = vrot.lane.b32.xlu0 %v101_v0, %s131_s10  ;;  %19 = vrot.lane.b32.xlu1 %v103_v1, %s132_s11  ;;  %v104_v3 = vld [vmem:[%s207_s0 + $0xc] sm:$0x1]   ;;  %s133_s16 = smov 112   ;;  %s134_s17 = smov 96   ;;  %v105_v4 = vld [vmem:[%s207_s0 + $0xb] sm:$0x1]  }
   0x3   :  { %v106_v5 = vld [vmem:[%s207_s0 + $0xa] sm:$0x1]   ;;  %v2_v6 = vld [vmem:[%s207_s0] sm:$0x1]   ;;  %s135_s24 = smov 88   ;;  %s136_s25 = smov 80  }
   0x4   :  { %4 = vst.msk [vmem:[#allocation0] sm:$0x1] %vm3_vm0, %v2_v6   ;;  %v107_v7 = vld [vmem:[%s207_s0 + $0x9] sm:$0x1]   ;;  %v108_v8 = vld [vmem:[%s207_s0 + $0x8] sm:$0x1]  }
   0x5   :  { %s137_s30 = smov 72   ;;  %s138_s2 = smov 64   ;;  %v109_v9 = vld [vmem:[%s207_s0 + $0x7] sm:$0x1]   ;;  %v110_v10 = vld [vmem:[%s207_s0 + $0x6] sm:$0x1]  }
   0x6   :  { %13 = vrot.lane.b32.xlu0 %v102_v2, %s133_s16  ;;  %25 = vrot.lane.b32.xlu1 %v104_v3, %s134_s17  ;;  %s139_s7 = smov 56   ;;  %s140_s8 = smov 48   ;;  %v111_v11 = vld [vmem:[%s207_s0 + $0x5] sm:$0x1]   ;;  %v112_v12 = vld [vmem:[%s207_s0 + $0x4] sm:$0x1]  }
   0x7   :  { %s141_s13 = smov 40   ;;  %s142_s14 = smov 32   ;;  %v113_v13 = vld [vmem:[%s207_s0 + $0x3] sm:$0x1]   ;;  %v114_v14 = vld [vmem:[%s207_s0 + $0x2] sm:$0x1]  }
   0x8   :  { %s143_s19 = smov 24   ;;  %s144_s20 = smov 16   ;;  %v115_v15 = vld [vmem:[%s207_s0 + $0x1] sm:$0x1]   ;;  %vm27_vm4 = vcmask 851712   ;;  %vm33_vm5 = vcmask 786112  }
   0x9   :  { %s145_s0 = smov 8   ;;  %vm39_vm6 = vcmask 720512   ;;  %vm45_vm7 = vcmask 654912   ;;  %vm51_vm8 = vcmask 589312   ;;  %vm57_vm9 = vcmask 523712  }
   0xa   :  { %31 = vrot.lane.b32.xlu0 %v105_v4, %s135_s24  ;;  %37 = vrot.lane.b32.xlu1 %v106_v5, %s136_s25  ;;  %vm63_vm10 = vcmask 458112   ;;  %vm69_vm11 = vcmask 392512   ;;  %vm75_vm12 = vcmask 326912   ;;  %vm81_vm13 = vcmask 261312  }
   0xb   :  { %vm87_vm14 = vcmask 195712   ;;  %vm93_vm15 = vcmask 130112  }
   0xe   :  { %43 = vrot.lane.b32.xlu0 %v107_v7, %s137_s30  ;;  %49 = vrot.lane.b32.xlu1 %v108_v8, %s138_s2 }
  0x12   :  { %55 = vrot.lane.b32.xlu0 %v109_v9, %s139_s7  ;;  %61 = vrot.lane.b32.xlu1 %v110_v10, %s140_s8 }
  0x16   :  { %67 = vrot.lane.b32.xlu0 %v111_v11, %s141_s13  ;;  %73 = vrot.lane.b32.xlu1 %v112_v12, %s142_s14 }
  0x1a   :  { %79 = vrot.lane.b32.xlu0 %v113_v13, %s143_s19  ;;  %85 = vrot.lane.b32.xlu1 %v114_v14, %s144_s20 }
  0x1e   :  { %91 = vrot.lane.b32.xlu0 %v115_v15, %s145_s0 }
  0x74   :  { %v8_v16 = vpop.permute.xlu0 %7   ;;  %v20_v17 = vpop.permute.xlu1 %19  }
  0x75   :  { %10 = vst.msk [vmem:[#allocation0] sm:$0x1] %vm9_vm1, %v8_v16  }
  0x78   :  { %v14_v18 = vpop.permute.xlu0 %13   ;;  %v26_v19 = vpop.permute.xlu1 %25  }
  0x79   :  { %16 = vst.msk [vmem:[#allocation0] sm:$0x1] %vm15_vm2, %v14_v18  }
  0x7a   :  { %22 = vst.msk [vmem:[#allocation0] sm:$0x1] %vm21_vm3, %v20_v17  }
  0x7b   :  { %28 = vst.msk [vmem:[#allocation0] sm:$0x1] %vm27_vm4, %v26_v19  }
  0x7c   :  { %v32_v20 = vpop.permute.xlu0 %31   ;;  %v38_v21 = vpop.permute.xlu1 %37  }
  0x7d   :  { %34 = vst.msk [vmem:[#allocation0] sm:$0x1] %vm33_vm5, %v32_v20  }
  0x7e   :  { %40 = vst.msk [vmem:[#allocation0] sm:$0x1] %vm39_vm6, %v38_v21  }
  0x80   :  { %v44_v22 = vpop.permute.xlu0 %43   ;;  %v50_v23 = vpop.permute.xlu1 %49  }
  0x81   :  { %46 = vst.msk [vmem:[#allocation0] sm:$0x1] %vm45_vm7, %v44_v22  }
  0x82   :  { %52 = vst.msk [vmem:[#allocation0] sm:$0x1] %vm51_vm8, %v50_v23  }
  0x84   :  { %v56_v24 = vpop.permute.xlu0 %55   ;;  %v62_v25 = vpop.permute.xlu1 %61  }
  0x85   :  { %58 = vst.msk [vmem:[#allocation0] sm:$0x1] %vm57_vm9, %v56_v24  }
  0x86   :  { %64 = vst.msk [vmem:[#allocation0] sm:$0x1] %vm63_vm10, %v62_v25  }
  0x88   :  { %v68_v26 = vpop.permute.xlu0 %67   ;;  %v74_v27 = vpop.permute.xlu1 %73  }
  0x89   :  { %70 = vst.msk [vmem:[#allocation0] sm:$0x1] %vm69_vm11, %v68_v26  }
  0x8a   :  { %76 = vst.msk [vmem:[#allocation0] sm:$0x1] %vm75_vm12, %v74_v27  }
  0x8c   :  { %v80_v28 = vpop.permute.xlu0 %79   ;;  %v86_v29 = vpop.permute.xlu1 %85  }
  0x8d   :  { %82 = vst.msk [vmem:[#allocation0] sm:$0x1] %vm81_vm13, %v80_v28  }
  0x8e   :  { %88 = vst.msk [vmem:[#allocation0] sm:$0x1] %vm87_vm14, %v86_v29  }
  0x90   :  { %v92_v30 = vpop.permute.xlu0 %91  }
  0x91   :  { %94 = vst.msk [vmem:[#allocation0] sm:$0x1] %vm93_vm15, %v92_v30  }
  0x98   :  { %v98_v31 = vld [vmem:[#allocation0] sm:$0x1] }
  0x99   :  { %100 = vst [vmem:[%s208_s1] sm:$0x1] %v98_v31 }

// kernel: sepconv_subsample.1
= control target key start
LH: loop header
LB: loop body
LE: loop exit
PB: predicated region body
PF: predicated region fallthrough
CT: control target
= control target key end

     0   :  { %v861_v3 = vmov 0.0   ;;  %s1231_s1 = inlined_call_operand.vmem [shape: f32[384,128], index: 1, kind: input, shape index: {}]   ;;  %s1232_s0 = inlined_call_operand.vmem [shape: f32[2,16,128], index: 0, kind: input, shape index: {}]   ;;  %s1233_s3 = inlined_call_operand.vmem [shape: f32[384,128], index: 3, kind: input, shape index: {}]   ;;  %s1234_s2 = inlined_call_operand.vmem [shape: f32[1,128], index: 2, kind: input, shape index: {}]   ;;  %s1235_s4 = inlined_call_operand.vmem [shape: f32[1,128], index: 4, kind: input, shape index: {}]   ;;  %s1236_s5 = inlined_call_operand.vmem [shape: f32[2,16,128], index: 5, kind: output, shape index: {}]  }
   0x1   :  { %v64_v0 = vld [vmem:[%s1231_s1 + $0x80] sm:$0xff]  ;;  %v65_v1 = vld [vmem:[%s1231_s1 + $0x88] sm:$0xff]  ;;  %20 = vst [vmem:[#allocation2] sm:$0x1] %v861_v3  ;;  %21 = vst [vmem:[#allocation2 + $0x18] sm:$0x1] %v861_v3 }
   0x2   :  { %v48_v2 = vld [vmem:[%s1231_s1] sm:$0xff]  ;;  %22 = vst [vmem:[#allocation2 + $0x11] sm:$0x1] %v861_v3  ;;  %23 = vst [vmem:[#allocation2 + $0x29] sm:$0x1] %v861_v3  ;;  %v732_v4 = vpack.c.bf16 %v65_v1, %v64_v0  ;;  %v49_v5 = vld [vmem:[%s1231_s1 + $0x8] sm:$0xff] }
   0x3   :  { %v80_v6 = vld [vmem:[%s1231_s1 + $0x100] sm:$0xff]  ;;  %v81_v7 = vld [vmem:[%s1231_s1 + $0x108] sm:$0xff]  ;;  %v734_v8 = vpack.c.bf16 %v49_v5, %v48_v2  ;;  %v66_v10 = vld [vmem:[%s1231_s1 + $0x90] sm:$0xff] }
   0x4   :  { %v764_v9 = vpack.c.bf16 %v81_v7, %v80_v6  ;;  %v67_v11 = vld [vmem:[%s1231_s1 + $0x98] sm:$0xff]  ;;  %v50_v12 = vld [vmem:[%s1231_s1 + $0x10] sm:$0xff]  ;;  %733 = vmatprep.subr.bf16.mxu0 %v732_v4  ;;  %v68_v19 = vld [vmem:[%s1231_s1 + $0xa0] sm:$0xff] }
   0x5   :  { %v736_v13 = vpack.c.bf16 %v67_v11, %v66_v10  ;;  %v51_v14 = vld [vmem:[%s1231_s1 + $0x18] sm:$0xff]  ;;  %v82_v15 = vld [vmem:[%s1231_s1 + $0x110] sm:$0xff]  ;;  %735 = vmatpush3.bf16.msra.mxu0 %v734_v8  ;;  %v69_v20 = vld [vmem:[%s1231_s1 + $0xa8] sm:$0xff] }
   0x6   :  { %v83_v16 = vld [vmem:[%s1231_s1 + $0x118] sm:$0xff]  ;;  %765 = vmatprep.subr.bf16.mxu1 %v764_v9  ;;  %v738_v17 = vpack.c.bf16 %v51_v14, %v50_v12  ;;  %v52_v21 = vld [vmem:[%s1231_s1 + $0x20] sm:$0xff]  ;;  %v740_v22 = vpack.c.bf16 %v69_v20, %v68_v19  ;;  %v53_v23 = vld [vmem:[%s1231_s1 + $0x28] sm:$0xff] }
   0x7   :  { %v768_v18 = vpack.c.bf16 %v83_v16, %v82_v15  ;;  %737 = vmatprep.subr.bf16.mxu0 %v736_v13  ;;  %767 = vmatpush3.bf16.msra.mxu1 %v764_v9  ;;  %v84_v24 = vld [vmem:[%s1231_s1 + $0x120] sm:$0xff]  ;;  %v85_v25 = vld [vmem:[%s1231_s1 + $0x128] sm:$0xff]  ;;  %v70_v27 = vld [vmem:[%s1231_s1 + $0xb0] sm:$0xff]  ;;  %v742_v31 = vpack.c.bf16 %v53_v23, %v52_v21 }
   0x8   :  { %v772_v26 = vpack.c.bf16 %v85_v25, %v84_v24  ;;  %v71_v28 = vld [vmem:[%s1231_s1 + $0xb8] sm:$0xff]  ;;  %v86_v29 = vld [vmem:[%s1231_s1 + $0x130] sm:$0xff]  ;;  %v72_v36 = vld [vmem:[%s1231_s1 + $0xc0] sm:$0xff] }
   0x9   :  { %769 = vmatprep.subr.bf16.mxu1 %v768_v18  ;;  %v87_v30 = vld [vmem:[%s1231_s1 + $0x138] sm:$0xff]  ;;  %739 = vmatpush3.bf16.msra.mxu0 %v738_v17  ;;  %v744_v32 = vpack.c.bf16 %v71_v28, %v70_v27  ;;  %v54_v33 = vld [vmem:[%s1231_s1 + $0x30] sm:$0xff]  ;;  %v73_v37 = vld [vmem:[%s1231_s1 + $0xc8] sm:$0xff] }
   0xa   :  { %741 = vmatprep.subr.bf16.mxu0 %v740_v22  ;;  %v55_v34 = vld [vmem:[%s1231_s1 + $0x38] sm:$0xff]  ;;  %v776_v35 = vpack.c.bf16 %v87_v30, %v86_v29  ;;  %v88_v38 = vld [vmem:[%s1231_s1 + $0x140] sm:$0xff]  ;;  %v89_v39 = vld [vmem:[%s1231_s1 + $0x148] sm:$0xff]  ;;  %v748_v41 = vpack.c.bf16 %v73_v37, %v72_v36 }
   0xb   :  { %771 = vmatpush3.bf16.msra.mxu1 %v768_v18  ;;  %v746_v40 = vpack.c.bf16 %v55_v34, %v54_v33  ;;  %v56_v42 = vld [vmem:[%s1231_s1 + $0x40] sm:$0xff]  ;;  %v57_v43 = vld [vmem:[%s1231_s1 + $0x48] sm:$0xff]  ;;  %v780_v44 = vpack.c.bf16 %v89_v39, %v88_v38  ;;  %v74_v45 = vld [vmem:[%s1231_s1 + $0xd0] sm:$0xff] }
   0xc   :  { %773 = vmatprep.subr.bf16.mxu1 %v772_v26  ;;  %v75_v46 = vld [vmem:[%s1231_s1 + $0xd8] sm:$0xff]  ;;  %v90_v47 = vld [vmem:[%s1231_s1 + $0x150] sm:$0xff]  ;;  %v24_v49 = vld [vmem:[%s1232_s0] sm:$0xff]  ;;  %v750_v50 = vpack.c.bf16 %v57_v43, %v56_v42 }
   0xd   :  { %743 = vmatpush3.bf16.msra.mxu0 %v742_v31  ;;  %v91_v48 = vld [vmem:[%s1231_s1 + $0x158] sm:$0xff]  ;;  %v28_v51 = vmax.f32 %v24_v49, 0.0  ;;  %v1000_v52 = vld [vmem:[%s1232_s0 + $0x8] sm:$0xff]  ;;  %v1005_v53 = vld [vmem:[%s1232_s0 + $0x10] sm:$0xff]  ;;  %v752_v54 = vpack.c.bf16 %v75_v46, %v74_v45 }
   0xe   :  { %745 = vmatprep.subr.bf16.mxu0 %v744_v32  ;;  %v58_v55 = vld [vmem:[%s1231_s1 + $0x50] sm:$0xff]  ;;  %v59_v56 = vld [vmem:[%s1231_s1 + $0x58] sm:$0xff]  ;;  %v29_v57 = vmax.f32 %v1000_v52, 0.0  ;;  %v30_v58 = vmax.f32 %v1005_v53, 0.0  ;;  %v784_v60 = vpack.c.bf16 %v91_v48, %v90_v47  ;;  %v76_v61 = vld [vmem:[%s1231_s1 + $0xe0] sm:$0xff] }
   0xf   :  { %775 = vmatpush3.bf16.msra.mxu1 %v772_v26  ;;  %v1018_v59 = vld [vmem:[%s1232_s0 + $0x18] sm:$0xff]  ;;  %v77_v62 = vld [vmem:[%s1231_s1 + $0xe8] sm:$0xff]  ;;  %32 = vst [vmem:[#allocation2 + $0x1] sm:$0xff] %v28_v51  ;;  %167 = vmatprep.mubr.f32.mxu0 %v28_v51  ;;  %v92_v0 = vld [vmem:[%s1231_s1 + $0x160] sm:$0xff]  ;;  %v754_v2 = vpack.c.bf16 %v59_v56, %v58_v55 }
  0x10   :  { %777 = vmatprep.subr.bf16.mxu1 %v776_v35  ;;  %v31_v63 = vmax.f32 %v1018_v59, 0.0  ;;  %v93_v1 = vld [vmem:[%s1231_s1 + $0x168] sm:$0xff]  ;;  %33 = vst [vmem:[#allocation2 + $0x9] sm:$0xff] %v29_v57  ;;  %34 = vst [vmem:[#allocation2 + $0x19] sm:$0xff] %v30_v58  ;;  %v756_v3 = vpack.c.bf16 %v77_v62, %v76_v61  ;;  %v60_v4 = vld [vmem:[%s1231_s1 + $0x60] sm:$0xff] }
  0x11   :  { %747 = vmatpush3.bf16.msra.mxu0 %v746_v40  ;;  %v61_v5 = vld [vmem:[%s1231_s1 + $0x68] sm:$0xff]  ;;  %v788_v6 = vpack.c.bf16 %v93_v1, %v92_v0  ;;  %v78_v7 = vld [vmem:[%s1231_s1 + $0xf0] sm:$0xff]  ;;  %v79_v8 = vld [vmem:[%s1231_s1 + $0xf8] sm:$0xff] }
  0x12   :  { %749 = vmatprep.subr.bf16.mxu0 %v748_v41  ;;  %35 = vst [vmem:[#allocation2 + $0x21] sm:$0xff] %v31_v63  ;;  %v94_v9 = vld [vmem:[%s1231_s1 + $0x170] sm:$0xff]  ;;  %v95_v10 = vld [vmem:[%s1231_s1 + $0x178] sm:$0xff]  ;;  %v758_v11 = vpack.c.bf16 %v61_v5, %v60_v4  ;;  %v760_v12 = vpack.c.bf16 %v79_v8, %v78_v7  ;;  %v309_v17 = vld [vmem:[%s1233_s3 + $0x80] sm:$0xff] }
  0x13   :  { %779 = vmatpush3.bf16.msra.mxu1 %v776_v35  ;;  %v62_v13 = vld [vmem:[%s1231_s1 + $0x70] sm:$0xff]  ;;  %v63_v14 = vld [vmem:[%s1231_s1 + $0x78] sm:$0xff]  ;;  %v792_v15 = vpack.c.bf16 %v95_v10, %v94_v9  ;;  %v310_v18 = vld [vmem:[%s1233_s3 + $0x88] sm:$0xff] }
  0x14   :  { %781 = vmatprep.subr.bf16.mxu1 %v780_v44  ;;  %v325_v19 = vld [vmem:[%s1233_s3 + $0x100] sm:$0xff]  ;;  %v326_v20 = vld [vmem:[%s1233_s3 + $0x108] sm:$0xff]  ;;  %v762_v21 = vpack.c.bf16 %v63_v14, %v62_v13  ;;  %v796_v22 = vpack.c.bf16 %v310_v18, %v309_v17  ;;  %v311_v26 = vld [vmem:[%s1233_s3 + $0x90] sm:$0xff] }
  0x15   :  { %751 = vmatpush3.bf16.msra.mxu0 %v750_v50  ;;  %v293_v23 = vld [vmem:[%s1233_s3] sm:$0xff]  ;;  %v294_v24 = vld [vmem:[%s1233_s3 + $0x8] sm:$0xff]  ;;  %v828_v25 = vpack.c.bf16 %v326_v20, %v325_v19  ;;  %v312_v27 = vld [vmem:[%s1233_s3 + $0x98] sm:$0xff] }
  0x16   :  { %753 = vmatprep.subr.bf16.mxu0 %v752_v54  ;;  %v36_v28 = vld [vmem:[#allocation2] sm:$0xff]  ;;  %v327_v29 = vld [vmem:[%s1233_s3 + $0x110] sm:$0xff]  ;;  %v328_v30 = vld [vmem:[%s1233_s3 + $0x118] sm:$0xff]  ;;  %v798_v32 = vpack.c.bf16 %v294_v24, %v293_v23  ;;  %v800_v34 = vpack.c.bf16 %v312_v27, %v311_v26 }
  0x17   :  { %783 = vmatpush3.bf16.msra.mxu1 %v780_v44  ;;  %v44_v16 = vld [vmem:[#allocation2 + $0x2] sm:$0xff]  ;;  %v45_v31 = vld [vmem:[#allocation2 + $0xa] sm:$0xff]  ;;  %v296_v36 = vld [vmem:[%s1233_s3 + $0x18] sm:$0xff]  ;;  %v832_v39 = vpack.c.bf16 %v328_v30, %v327_v29 }
  0x18   :  { %785 = vmatprep.subr.bf16.mxu1 %v784_v60  ;;  %688 = vmatprep.mubr.f32.mxu1 %v44_v16  ;;  %v295_v35 = vld [vmem:[%s1233_s3 + $0x10] sm:$0xff]  ;;  %v313_v37 = vld [vmem:[%s1233_s3 + $0xa0] sm:$0xff]  ;;  %v314_v38 = vld [vmem:[%s1233_s3 + $0xa8] sm:$0xff] }
  0x19   :  { %755 = vmatpush3.bf16.msra.mxu0 %v754_v2  ;;  %v46_v33 = vld [vmem:[#allocation2 + $0x1a] sm:$0xff]  ;;  %v37_v40 = vld [vmem:[#allocation2 + $0x8] sm:$0xff]  ;;  %v802_v44 = vpack.c.bf16 %v296_v36, %v295_v35  ;;  %v804_v45 = vpack.c.bf16 %v314_v38, %v313_v37  ;;  %v315_v48 = vld [vmem:[%s1233_s3 + $0xb0] sm:$0xff] }
  0x1a   :  { %757 = vmatprep.subr.bf16.mxu0 %v756_v3  ;;  %v329_v41 = vld [vmem:[%s1233_s3 + $0x120] sm:$0xff]  ;;  %v330_v42 = vld [vmem:[%s1233_s3 + $0x128] sm:$0xff]  ;;  %v316_v49 = vld [vmem:[%s1233_s3 + $0xb8] sm:$0xff] }
  0x1b   :  { %787 = vmatpush3.bf16.msra.mxu1 %v784_v60  ;;  %v47_v43 = vld [vmem:[#allocation2 + $0x22] sm:$0xff]  ;;  %v836_v50 = vpack.c.bf16 %v330_v42, %v329_v41  ;;  %v38_v51 = vld [vmem:[#allocation2 + $0x18] sm:$0xff]  ;;  %v808_v54 = vpack.c.bf16 %v316_v49, %v315_v48  ;;  %v299_v53 = vld [vmem:[%s1233_s3 + $0x30] sm:$0xff] }
  0x1c   :  { %789 = vmatprep.subr.bf16.mxu1 %v788_v6  ;;  %v297_v46 = vld [vmem:[%s1233_s3 + $0x20] sm:$0xff]  ;;  %v298_v47 = vld [vmem:[%s1233_s3 + $0x28] sm:$0xff]  ;;  %v300_v56 = vld [vmem:[%s1233_s3 + $0x38] sm:$0xff] }
  0x1d   :  { %759 = vmatpush3.bf16.msra.mxu0 %v758_v11  ;;  %v806_v52 = vpack.c.bf16 %v298_v47, %v297_v46  ;;  %v39_v55 = vld [vmem:[#allocation2 + $0x20] sm:$0xff]  ;;  %v318_v59 = vld [vmem:[%s1233_s3 + $0xc8] sm:$0xff]  ;;  %v331_v61 = vld [vmem:[%s1233_s3 + $0x130] sm:$0xff] }
  0x1e   :  { %761 = vmatprep.subr.bf16.mxu0 %v760_v12  ;;  %v332_v62 = vld [vmem:[%s1233_s3 + $0x138] sm:$0xff]  ;;  %v302_v1 = vld [vmem:[%s1233_s3 + $0x48] sm:$0xff]  ;;  %v319_v3 = vld [vmem:[%s1233_s3 + $0xd0] sm:$0xff] }
  0x1f   :  { %791 = vmatpush3.bf16.msra.mxu1 %v788_v6  ;;  %v840_v0 = vpack.c.bf16 %v332_v62, %v331_v61  ;;  %v320_v4 = vld [vmem:[%s1233_s3 + $0xd8] sm:$0xff]  ;;  %v333_v6 = vld [vmem:[%s1233_s3 + $0x140] sm:$0xff]  ;;  %v334_v7 = vld [vmem:[%s1233_s3 + $0x148] sm:$0xff] }
  0x20   :  { %793 = vmatprep.subr.bf16.mxu1 %v792_v15  ;;  %v816_v5 = vpack.c.bf16 %v320_v4, %v319_v3  ;;  %v303_v8 = vld [vmem:[%s1233_s3 + $0x50] sm:$0xff]  ;;  %v844_v9 = vpack.c.bf16 %v334_v7, %v333_v6  ;;  %v304_v10 = vld [vmem:[%s1233_s3 + $0x58] sm:$0xff]  ;;  %v321_v12 = vld [vmem:[%s1233_s3 + $0xe0] sm:$0xff] }
  0x21   :  { %763 = vmatpush3.bf16.msra.mxu0 %v762_v21  ;;  %v818_v11 = vpack.c.bf16 %v304_v10, %v303_v8  ;;  %v322_v13 = vld [vmem:[%s1233_s3 + $0xe8] sm:$0xff]  ;;  %v336_v16 = vld [vmem:[%s1233_s3 + $0x158] sm:$0xff]  ;;  %v305_v17 = vld [vmem:[%s1233_s3 + $0x60] sm:$0xff] }
  0x22   :  { %797 = vmatprep.subr.bf16.mxu0 %v796_v22  ;;  %v820_v14 = vpack.c.bf16 %v322_v13, %v321_v12  ;;  %v306_v19 = vld [vmem:[%s1233_s3 + $0x68] sm:$0xff]  ;;  %v323_v21 = vld [vmem:[%s1233_s3 + $0xf0] sm:$0xff]  ;;  %v324_v22 = vld [vmem:[%s1233_s3 + $0xf8] sm:$0xff] }
  0x23   :  { %795 = vmatpush3.bf16.msra.mxu1 %v792_v15  ;;  %v335_v15 = vld [vmem:[%s1233_s3 + $0x150] sm:$0xff]  ;;  %v822_v20 = vpack.c.bf16 %v306_v19, %v305_v17  ;;  %v824_v23 = vpack.c.bf16 %v324_v22, %v323_v21  ;;  %v337_v24 = vld [vmem:[%s1233_s3 + $0x160] sm:$0xff] }
  0x24   :  { %829 = vmatprep.subr.bf16.mxu1 %v828_v25  ;;  %168 = vmatmul.mubr.f32.vlgmr.msra.gmra.mrb[0].mxu0 %v36_v28  ;;  %v848_v18 = vpack.c.bf16 %v336_v16, %v335_v15  ;;  %v307_v26 = vld [vmem:[%s1233_s3 + $0x70] sm:$0xff]  ;;  %v308_v28 = vld [vmem:[%s1233_s3 + $0x78] sm:$0xff]  ;;  %v526_v36 = vld [vmem:[%s1234_s2] ss:$0 sm:$0xff] }
  0x25   :  { %172 = vmatprep.mubr.f32.mxu0 %v29_v57  ;;  %799 = vmatpush3.bf16.msra.mxu0 %v798_v32  ;;  %v810_v57 = vpack.c.bf16 %v300_v56, %v299_v53  ;;  %v826_v29 = vpack.c.bf16 %v308_v28, %v307_v26  ;;  %v339_v30 = vld [vmem:[%s1233_s3 + $0x170] sm:$0xff]  ;;  %v527_v8 = vld [vmem:[%s1235_s4] ss:$0 sm:$0xff] }
  0x26   :  { %689 = vmatmul.mubr.f32.vlgmr.msra.gmra.mrb[0].mxu1 %v45_v31  ;;  %801 = vmatprep.subr.bf16.mxu0 %v800_v34  ;;  %v340_v31 = vld [vmem:[%s1233_s3 + $0x178] sm:$0xff] }
  0x27   :  { %691 = vmatprep.mubr.f32.mxu1 %v46_v33  ;;  %831 = vmatpush3.bf16.msra.mxu1 %v828_v25  ;;  %v338_v25 = vld [vmem:[%s1233_s3 + $0x168] sm:$0xff]  ;;  %v856_v32 = vpack.c.bf16 %v340_v31, %v339_v30 }
  0x28   :  { %173 = vmatmul.mubr.f32.gmra.mrb[2].mxu0 %v37_v40  ;;  %833 = vmatprep.subr.bf16.mxu1 %v832_v39  ;;  %v852_v27 = vpack.c.bf16 %v338_v25, %v337_v24 }
  0x29   :  { %177 = vmatprep.mubr.f32.mxu0 %v30_v58  ;;  %803 = vmatpush3.bf16.msra.mxu0 %v802_v44  ;;  %v317_v58 = vld [vmem:[%s1233_s3 + $0xc0] sm:$0xff] }
  0x2a   :  { %692 = vmatmul.mubr.f32.gmra.mrb[2].mxu1 %v47_v43  ;;  %805 = vmatprep.subr.bf16.mxu0 %v804_v45  ;;  %v812_v60 = vpack.c.bf16 %v318_v59, %v317_v58 }
  0x2b   :  { %835 = vmatpush3.bf16.msra.mxu1 %v832_v39 }
  0x2c   :  { %178 = vmatmul.mubr.f32.gmra.mrb[4].mxu0 %v38_v51  ;;  %837 = vmatprep.subr.bf16.mxu1 %v836_v50 }
  0x2d   :  { %182 = vmatprep.mubr.f32.mxu0 %v31_v63  ;;  %807 = vmatpush3.bf16.msra.mxu0 %v806_v52  ;;  %v301_v63 = vld [vmem:[%s1233_s3 + $0x40] sm:$0xff] }
  0x2e   :  { %809 = vmatprep.subr.bf16.mxu0 %v808_v54  ;;  %v814_v2 = vpack.c.bf16 %v302_v1, %v301_v63 }
  0x2f   :  { %839 = vmatpush3.bf16.msra.mxu1 %v836_v50 }
  0x30   :  { %183 = vmatmul.mubr.f32.gmra.mrb[6].mxu0 %v39_v55  ;;  %841 = vmatprep.subr.bf16.mxu1 %v840_v0 }
  0x31   :  { %811 = vmatpush3.bf16.msra.mxu0 %v810_v57 }
  0x32   :  { %813 = vmatprep.subr.bf16.mxu0 %v812_v60 }
  0x33   :  { %843 = vmatpush3.bf16.msra.mxu1 %v840_v0 }
  0x34   :  { %845 = vmatprep.subr.bf16.mxu1 %v844_v9 }
  0x35   :  { %815 = vmatpush3.bf16.msra.mxu0 %v814_v2 }
  0x36   :  { %817 = vmatprep.subr.bf16.mxu0 %v816_v5 }
  0x37   :  { %847 = vmatpush3.bf16.msra.mxu1 %v844_v9 }
  0x38   :  { %849 = vmatprep.subr.bf16.mxu1 %v848_v18 }
  0x39   :  { %819 = vmatpush3.bf16.msra.mxu0 %v818_v11 }
  0x3a   :  { %821 = vmatprep.subr.bf16.mxu0 %v820_v14 }
  0x3b   :  { %851 = vmatpush3.bf16.msra.mxu1 %v848_v18 }
  0x3c   :  { %853 = vmatprep.subr.bf16.mxu1 %v852_v27 }
  0x3d   :  { %823 = vmatpush3.bf16.msra.mxu0 %v822_v20 }
  0x3e   :  { %825 = vmatprep.subr.bf16.mxu0 %v824_v23 }
  0x3f   :  { %855 = vmatpush3.bf16.msra.mxu1 %v852_v27 }
  0x40   :  { %857 = vmatprep.subr.bf16.mxu1 %v856_v32 }
  0x41   :  { %827 = vmatpush3.bf16.msra.mxu0 %v826_v29 }
  0x43   :  { %859 = vmatpush3.bf16.msra.mxu1 %v856_v32 }
  0xf7   :  { %v560_v33 = vpop.f32.mrb[0].mxu0 }
  0xf8   :  { %v561_v34 = vpop.f32.mrb[1].mxu0 }
  0xf9   :  { %v690_v35 = vpop.f32.mrb[0].mxu1  ;;  %v562_v37 = vadd.f32 %v561_v34, %v560_v33 }
  0xfa   :  { %v254_v38 = vpop.f32.mrb[1].mxu1 }
  0xfb   :  { %v563_v39 = vpop.f32.mrb[2].mxu0  ;;  %v170_v40 = vadd.f32 %v562_v37, %v526_v36 }
  0xfc   :  { %v564_v41 = vpop.f32.mrb[3].mxu0 }
  0xfd   :  { %v693_v42 = vpop.f32.mrb[2].mxu1  ;;  %v255_v43 = vadd.f32 %v254_v38, %v170_v40  ;;  %v565_v44 = vadd.f32 %v564_v41, %v563_v39 }
  0xfe   :  { %v264_v45 = vpop.f32.mrb[3].mxu1 }
  0xff   :  { %v273_v46 = vmax.f32 %v255_v43, 0.0  ;;  %v175_v47 = vadd.f32 %v565_v44, %v526_v36  ;;  %v566_v48 = vpop.f32.mrb[4].mxu0 }
 0x100   :  { %v567_v49 = vpop.f32.mrb[5].mxu0 }
 0x101   :  { %277 = vst [vmem:[#allocation2 + $0x1] sm:$0xff] %v273_v46  ;;  %v260_v50 = vadd.f32 %v690_v35, %v175_v47  ;;  %v568_v51 = vadd.f32 %v567_v49, %v566_v48  ;;  %412 = vmatprep.mubr.f32.mxu0 %v273_v46 }
 0x103   :  { %v274_v52 = vmax.f32 %v260_v50, 0.0  ;;  %v569_v54 = vpop.f32.mrb[6].mxu0  ;;  %v180_v55 = vadd.f32 %v568_v51, %v526_v36 }
 0x104   :  { %v570_v53 = vpop.f32.mrb[7].mxu0 }
 0x105   :  { %278 = vst [vmem:[#allocation2 + $0x9] sm:$0xff] %v274_v52  ;;  %v265_v56 = vadd.f32 %v264_v45, %v180_v55  ;;  %v571_v57 = vadd.f32 %v570_v53, %v569_v54 }
 0x107   :  { %v275_v58 = vmax.f32 %v265_v56, 0.0  ;;  %v185_v59 = vadd.f32 %v571_v57, %v526_v36 }
 0x108   :  { %v281_v60 = vld [vmem:[#allocation2] sm:$0xff] }
 0x109   :  { %279 = vst [vmem:[#allocation2 + $0x19] sm:$0xff] %v275_v58  ;;  %v270_v61 = vadd.f32 %v693_v42, %v185_v59  ;;  %413 = vmatmul.mubr.f32.vlgmr.msra.gmra.mrb[8].mxu0 %v281_v60 }
 0x10a   :  { %417 = vmatprep.mubr.f32.mxu0 %v274_v52 }
 0x10b   :  { %v276_v62 = vmax.f32 %v270_v61, 0.0 }
 0x10c   :  { %v289_v63 = vld [vmem:[#allocation2 + $0x2] sm:$0xff]  ;;  %v290_v1 = vld [vmem:[#allocation2 + $0xa] sm:$0xff] }
 0x10d   :  { %v282_v0 = vld [vmem:[#allocation2 + $0x8] sm:$0xff]  ;;  %280 = vst [vmem:[#allocation2 + $0x21] sm:$0xff] %v276_v62  ;;  %726 = vmatprep.mubr.f32.mxu1 %v289_v63 }
 0x10e   :  { %418 = vmatmul.mubr.f32.gmra.mrb[10].mxu0 %v282_v0  ;;  %727 = vmatmul.mubr.f32.vlgmr.msra.gmra.mrb[4].mxu1 %v290_v1 }
 0x10f   :  { %422 = vmatprep.mubr.f32.mxu0 %v275_v58 }
 0x110   :  { %v283_v2 = vld [vmem:[#allocation2 + $0x18] sm:$0xff] }
 0x112   :  { %423 = vmatmul.mubr.f32.gmra.mrb[12].mxu0 %v283_v2 }
 0x113   :  { %427 = vmatprep.mubr.f32.mxu0 %v276_v62 }
 0x114   :  { %v291_v3 = vld [vmem:[#allocation2 + $0x1a] sm:$0xff]  ;;  %v292_v5 = vld [vmem:[#allocation2 + $0x22] sm:$0xff] }
 0x115   :  { %v284_v4 = vld [vmem:[#allocation2 + $0x20] sm:$0xff]  ;;  %729 = vmatprep.mubr.f32.mxu1 %v291_v3 }
 0x116   :  { %428 = vmatmul.mubr.f32.gmra.mrb[14].mxu0 %v284_v4  ;;  %730 = vmatmul.mubr.f32.gmra.mrb[6].mxu1 %v292_v5 }
 0x1dc   :  { %v624_v6 = vpop.f32.mrb[8].mxu0 }
 0x1dd   :  { %v625_v7 = vpop.f32.mrb[9].mxu0 }
 0x1de   :  { %v626_v9 = vadd.f32 %v625_v7, %v624_v6 }
 0x1e0   :  { %v415_v11 = vadd.f32 %v626_v9, %v527_v8 }
 0x1e1   :  { %v627_v10 = vpop.f32.mrb[10].mxu0  ;;  %v728_v12 = vpop.f32.mrb[4].mxu1 }
 0x1e2   :  { %v628_v13 = vpop.f32.mrb[11].mxu0  ;;  %v499_v15 = vpop.f32.mrb[5].mxu1 }
 0x1e3   :  { %v629_v14 = vadd.f32 %v628_v13, %v627_v10  ;;  %v500_v16 = vadd.f32 %v499_v15, %v415_v11 }
 0x1e5   :  { %v420_v17 = vadd.f32 %v629_v14, %v527_v8  ;;  %v630_v18 = vpop.f32.mrb[12].mxu0  ;;  %518 = vst [vmem:[%s1236_s5] sm:$0xff] %v500_v16 }
 0x1e6   :  { %v631_v19 = vpop.f32.mrb[13].mxu0 }
 0x1e7   :  { %v505_v20 = vadd.f32 %v728_v12, %v420_v17  ;;  %v632_v21 = vadd.f32 %v631_v19, %v630_v18 }
 0x1e9   :  { %519 = vst [vmem:[%s1236_s5 + $0x8] sm:$0xff] %v505_v20  ;;  %v633_v22 = vpop.f32.mrb[14].mxu0  ;;  %v425_v23 = vadd.f32 %v632_v21, %v527_v8  ;;  %v731_v24 = vpop.f32.mrb[6].mxu1 }
 0x1ea   :  { %v634_v25 = vpop.f32.mrb[15].mxu0  ;;  %v509_v27 = vpop.f32.mrb[7].mxu1 }
 0x1eb   :  { %v635_v26 = vadd.f32 %v634_v25, %v633_v22  ;;  %v510_v28 = vadd.f32 %v509_v27, %v425_v23 }
 0x1ed   :  { %v430_v29 = vadd.f32 %v635_v26, %v527_v8  ;;  %520 = vst [vmem:[%s1236_s5 + $0x10] sm:$0xff] %v510_v28 }
 0x1ef   :  { %v515_v30 = vadd.f32 %v731_v24, %v430_v29 }
 0x1f1   :  { %521 = vst [vmem:[%s1236_s5 + $0x18] sm:$0xff] %v515_v30 }

</bundles_post_ra>
